<compile_context>
chip_gen: v7x
topology: tpu7x:2x2x1
jax: 0.10.0
libtpu: 0.0.40
codegen_flags: <defaults>
</compile_context>

<pallas_src>
import jax
import jax.numpy as jnp
from jax.experimental import pallas as pl
from jax.experimental.pallas import tpu as pltpu


def attention_cell_kernel(
    batch_H_ref, h_prev_ref, c_prev_ref, onehot_ref,
    w_i2h_t_ref, w_h2h_t_ref, b_h2h_ref, w_score_ref,
    w_gate_t_ref, b_gate_ref,
    h_out_ref, c_out_ref, alpha_out_ref,
):
    batch_H = batch_H_ref[...]                       # [B, T, D]
    B, T, D = batch_H.shape
    H = h_prev_ref.shape[1]

    h_prev = h_prev_ref[...]                         # [B, H]
    c_prev = c_prev_ref[...]                         # [B, H]
    onehot = onehot_ref[...]                         # [B, E]

    # --- attention projections (weights already stored [in, out]) ---
    bh_proj = jnp.dot(batch_H.reshape(B * T, D), w_i2h_t_ref[...],
                      preferred_element_type=jnp.float32).reshape(B, T, H)
    ph_proj = (jnp.dot(h_prev, w_h2h_t_ref[...],
                       preferred_element_type=jnp.float32) + b_h2h_ref[...])   # [B, H]

    # --- e = score(tanh(batch_H_proj + prev_hidden_proj)) ---
    # score is a width-1 Linear: do it as a VPU multiply + lane reduce instead
    # of an N=1 MXU matmul.
    t = jnp.tanh(bh_proj + ph_proj[:, None, :])                                # [B, T, H]
    e = jnp.sum(t * w_score_ref[...], axis=-1)                                 # [B, T]

    # --- alpha = softmax(e) over the time axis ---
    m = jnp.max(e, axis=1, keepdims=True)
    p = jnp.exp(e - m)
    alpha = p / jnp.sum(p, axis=1, keepdims=True)                              # [B, T]
    alpha_out_ref[...] = alpha                                                 # lane-dense store

    # --- context = sum_t alpha[b,t] * batch_H[b,t,:]  (VPU + sublane reduce) ---
    context = jnp.sum(alpha[:, :, None] * batch_H, axis=1)                     # [B, D]

    # --- LSTMCell: single fused gate matmul on concat([context, onehot, h_prev]) ---
    x = jnp.concatenate([context, onehot, h_prev], axis=1)                     # [B, D+E+H]
    gates = (jnp.dot(x, w_gate_t_ref[...], preferred_element_type=jnp.float32)
             + b_gate_ref[...])                                                # [B, 4H]

    i_g = jax.nn.sigmoid(gates[:, 0:H])
    f_g = jax.nn.sigmoid(gates[:, H:2 * H])
    g_g = jnp.tanh(gates[:, 2 * H:3 * H])
    o_g = jax.nn.sigmoid(gates[:, 3 * H:4 * H])

    c_new = f_g * c_prev + i_g * g_g
    h_new = o_g * jnp.tanh(c_new)
    h_out_ref[...] = h_new
    c_out_ref[...] = c_new


def attention_cell(prev_hidden, batch_H, char_onehots, params):
    """Pallas wrapper. prev_hidden = (h, c), each [B, H]."""
    h_prev, c_prev = prev_hidden
    B, T, D = batch_H.shape
    H = h_prev.shape[1]

    # One-time weight prep in the wrapper (hoisted / constant-folded by XLA):
    #   - all matmul weights stored [in_features, out_features] (no in-kernel .T)
    #   - gate weights fused: [w_ih | w_hh] -> [D+E+H, 4H], biases pre-summed.
    w_i2h_t = params['w_i2h'].T                                   # [D, H]
    w_h2h_t = params['w_h2h'].T                                   # [H, H]
    w_score_row = params['w_score'].reshape(1, H)                 # [1, H]
    w_gate_t = jnp.concatenate([params['w_ih'], params['w_hh']], axis=1).T  # [D+E+H, 4H]
    b_gate = (params['b_ih'] + params['b_hh']).reshape(1, 4 * H)  # [1, 4H]
    b_h2h = params['b_h2h'].reshape(1, H)                         # [1, H]

    vmem = pl.BlockSpec(memory_space=pltpu.MemorySpace.VMEM)
    out_shapes = (
        jax.ShapeDtypeStruct((B, H), jnp.float32),      # h_new
        jax.ShapeDtypeStruct((B, H), jnp.float32),      # c_new
        jax.ShapeDtypeStruct((B, T), jnp.float32),      # alpha (lane-dense)
    )
    h_new, c_new, alpha = pl.pallas_call(
        attention_cell_kernel,
        out_shape=out_shapes,
        in_specs=[vmem] * 10,
        out_specs=(vmem, vmem, vmem),
    )(batch_H, h_prev, c_prev, char_onehots,
      w_i2h_t, w_h2h_t, b_h2h, w_score_row, w_gate_t, b_gate)

    # Match the PyTorch alpha shape [B, T, 1] outside the kernel.
    return (h_new, c_new), alpha[:, :, None]


def attention_cell_ref(prev_hidden, batch_H, char_onehots, params):
    """Pure-JAX reference mirroring the PyTorch forward exactly."""
    h_prev, c_prev = prev_hidden
    H = h_prev.shape[1]
    bh_proj = batch_H @ params['w_i2h'].T
    ph_proj = h_prev @ params['w_h2h'].T + params['b_h2h']
    e = jnp.tanh(bh_proj + ph_proj[:, None, :]) @ params['w_score'].T  # [B, T, 1]
    alpha = jax.nn.softmax(e, axis=1)
    context = jnp.einsum('bto,btd->bd', alpha, batch_H)
    concat = jnp.concatenate([context, char_onehots], axis=1)
    gates = (concat @ params['w_ih'].T + params['b_ih']
             + h_prev @ params['w_hh'].T + params['b_hh'])
    i_g = jax.nn.sigmoid(gates[:, :H])
    f_g = jax.nn.sigmoid(gates[:, H:2 * H])
    g_g = jnp.tanh(gates[:, 2 * H:3 * H])
    o_g = jax.nn.sigmoid(gates[:, 3 * H:4 * H])
    c_new = f_g * c_prev + i_g * g_g
    h_new = o_g * jnp.tanh(c_new)
    return (h_new, c_new), alpha


if __name__ == "__main__":
    # Small shapes consistent with the module:
    # input_size = 32, hidden_size = 32, num_embeddings = 16, T = 16 steps, B = 2.
    B, T, D, H, E = 2, 16, 32, 32, 16

    key = jax.random.PRNGKey(0)
    ks = jax.random.split(key, 12)
    s = 0.1
    params = {
        'w_i2h':   s * jax.random.normal(ks[0], (H, D), jnp.float32),
        'w_h2h':   s * jax.random.normal(ks[1], (H, H), jnp.float32),
        'b_h2h':   s * jax.random.normal(ks[2], (H,), jnp.float32),
        'w_score': s * jax.random.normal(ks[3], (1, H), jnp.float32),
        'w_ih':    s * jax.random.normal(ks[4], (4 * H, D + E), jnp.float32),
        'b_ih':    s * jax.random.normal(ks[5], (4 * H,), jnp.float32),
        'w_hh':    s * jax.random.normal(ks[6], (4 * H, H), jnp.float32),
        'b_hh':    s * jax.random.normal(ks[7], (4 * H,), jnp.float32),
    }

    batch_H = jax.random.normal(ks[8], (B, T, D), jnp.float32)
    h0 = jax.random.normal(ks[9], (B, H), jnp.float32)
    c0 = jax.random.normal(ks[10], (B, H), jnp.float32)
    char_ids = jax.random.randint(ks[11], (B,), 0, E)
    char_onehots = jax.nn.one_hot(char_ids, E, dtype=jnp.float32)

    (h_new, c_new), alpha = attention_cell((h0, c0), batch_H, char_onehots, params)
    jax.block_until_ready((h_new, c_new, alpha))

    (h_ref, c_ref), a_ref = attention_cell_ref((h0, c0), batch_H, char_onehots, params)
    assert jnp.allclose(h_new, h_ref, atol=1e-5), "h mismatch"
    assert jnp.allclose(c_new, c_ref, atol=1e-5), "c mismatch"
    assert jnp.allclose(alpha, a_ref, atol=1e-5), "alpha mismatch"

    print("KERNEL_OK")
</pallas_src>

<mosaic_0001>
module attributes {stable_mosaic.version = 11 : i64} {
  func.func @attention_cell_kernel(%arg0: memref<2x16x32xf32, #tpu.memory_space<vmem>>, %arg1: memref<2x32xf32, #tpu.memory_space<vmem>>, %arg2: memref<2x32xf32, #tpu.memory_space<vmem>>, %arg3: memref<2x16xf32, #tpu.memory_space<vmem>>, %arg4: memref<32x32xf32, #tpu.memory_space<vmem>>, %arg5: memref<32x32xf32, #tpu.memory_space<vmem>>, %arg6: memref<1x32xf32, #tpu.memory_space<vmem>>, %arg7: memref<1x32xf32, #tpu.memory_space<vmem>>, %arg8: memref<80x128xf32, #tpu.memory_space<vmem>>, %arg9: memref<1x128xf32, #tpu.memory_space<vmem>>, %arg10: memref<2x32xf32, #tpu.memory_space<vmem>>, %arg11: memref<2x32xf32, #tpu.memory_space<vmem>>, %arg12: memref<2x16xf32, #tpu.memory_space<vmem>>) attributes {dimension_semantics = [], scalar_prefetch = 0 : i64, scratch_operands = 0 : i64, tpu.core_type = #tpu.core_type<tc>} {
    %c0 = arith.constant 0 : index
    %c0_0 = arith.constant 0 : index
    %c0_1 = arith.constant 0 : index
    %0 = vector.load %arg0[%c0, %c0_0, %c0_1] : memref<2x16x32xf32, #tpu.memory_space<vmem>>, vector<2x16x32xf32>
    %c0_2 = arith.constant 0 : index
    %c0_3 = arith.constant 0 : index
    %1 = vector.load %arg1[%c0_2, %c0_3] : memref<2x32xf32, #tpu.memory_space<vmem>>, vector<2x32xf32>
    %c0_4 = arith.constant 0 : index
    %c0_5 = arith.constant 0 : index
    %2 = vector.load %arg2[%c0_4, %c0_5] : memref<2x32xf32, #tpu.memory_space<vmem>>, vector<2x32xf32>
    %c0_6 = arith.constant 0 : index
    %c0_7 = arith.constant 0 : index
    %3 = vector.load %arg3[%c0_6, %c0_7] : memref<2x16xf32, #tpu.memory_space<vmem>>, vector<2x16xf32>
    %4 = vector.shape_cast %0 : vector<2x16x32xf32> to vector<32x32xf32>
    %c0_8 = arith.constant 0 : index
    %c0_9 = arith.constant 0 : index
    %5 = vector.load %arg4[%c0_8, %c0_9] : memref<32x32xf32, #tpu.memory_space<vmem>>, vector<32x32xf32>
    %cst = arith.constant dense<0.000000e+00> : vector<32x32xf32>
    %6 = tpu.matmul %4, %5, %cst {dimension_numbers = #tpu.dot_dimension_numbers<[1], [0], [0], [1], [0, 0, 1, 1], [], []>} : vector<32x32xf32>, vector<32x32xf32>, vector<32x32xf32> -> vector<32x32xf32>
    %7 = vector.shape_cast %6 : vector<32x32xf32> to vector<2x16x32xf32>
    %c0_10 = arith.constant 0 : index
    %c0_11 = arith.constant 0 : index
    %8 = vector.load %arg5[%c0_10, %c0_11] : memref<32x32xf32, #tpu.memory_space<vmem>>, vector<32x32xf32>
    %cst_12 = arith.constant dense<0.000000e+00> : vector<2x32xf32>
    %9 = tpu.matmul %1, %8, %cst_12 {dimension_numbers = #tpu.dot_dimension_numbers<[1], [0], [0], [1], [0, 0, 1, 1], [], []>} : vector<2x32xf32>, vector<32x32xf32>, vector<2x32xf32> -> vector<2x32xf32>
    %c0_13 = arith.constant 0 : index
    %c0_14 = arith.constant 0 : index
    %10 = vector.load %arg6[%c0_13, %c0_14] : memref<1x32xf32, #tpu.memory_space<vmem>>, vector<1x32xf32>
    %11 = vector.broadcast %10 : vector<1x32xf32> to vector<2x32xf32>
    %12 = arith.addf %9, %11 : vector<2x32xf32>
    %13 = vector.shape_cast %12 : vector<2x32xf32> to vector<2x1x32xf32>
    %14 = vector.broadcast %13 : vector<2x1x32xf32> to vector<2x16x32xf32>
    %15 = arith.addf %7, %14 : vector<2x16x32xf32>
    %16 = math.tanh %15 : vector<2x16x32xf32>
    %c0_15 = arith.constant 0 : index
    %c0_16 = arith.constant 0 : index
    %17 = vector.load %arg7[%c0_15, %c0_16] : memref<1x32xf32, #tpu.memory_space<vmem>>, vector<1x32xf32>
    %18 = vector.shape_cast %17 : vector<1x32xf32> to vector<1x1x32xf32>
    %19 = vector.broadcast %18 : vector<1x1x32xf32> to vector<2x16x32xf32>
    %20 = arith.mulf %16, %19 : vector<2x16x32xf32>
    %cst_17 = arith.constant dense<0.000000e+00> : vector<2x16xf32>
    %21 = vector.multi_reduction <add>, %20, %cst_17 [2] : vector<2x16x32xf32> to vector<2x16xf32>
    %cst_18 = arith.constant dense<0xFF800000> : vector<2xf32>
    %22 = vector.multi_reduction <maximumf>, %21, %cst_18 [1] : vector<2x16xf32> to vector<2xf32>
    %23 = vector.shape_cast %22 : vector<2xf32> to vector<2x1xf32>
    %24 = vector.broadcast %23 : vector<2x1xf32> to vector<2x16xf32>
    %25 = arith.subf %21, %24 : vector<2x16xf32>
    %26 = math.exp %25 : vector<2x16xf32>
    %cst_19 = arith.constant dense<0.000000e+00> : vector<2xf32>
    %27 = vector.multi_reduction <add>, %26, %cst_19 [1] : vector<2x16xf32> to vector<2xf32>
    %28 = vector.shape_cast %27 : vector<2xf32> to vector<2x1xf32>
    %29 = vector.broadcast %28 : vector<2x1xf32> to vector<2x16xf32>
    %30 = arith.divf %26, %29 : vector<2x16xf32>
    %c0_20 = arith.constant 0 : index
    %c0_21 = arith.constant 0 : index
    %31 = vector.load %arg12[%c0_20, %c0_21] : memref<2x16xf32, #tpu.memory_space<vmem>>, vector<2x16xf32>
    tpu.vector_store %arg12[%c0_20, %c0_21], %30 {strides = array<i32>} : memref<2x16xf32, #tpu.memory_space<vmem>>, vector<2x16xf32>,
    %32 = vector.shape_cast %30 : vector<2x16xf32> to vector<2x16x1xf32>
    %33 = vector.broadcast %32 : vector<2x16x1xf32> to vector<2x16x32xf32>
    %34 = arith.mulf %33, %0 : vector<2x16x32xf32>
    %cst_22 = arith.constant dense<0.000000e+00> : vector<2x32xf32>
    %35 = vector.multi_reduction <add>, %34, %cst_22 [1] : vector<2x16x32xf32> to vector<2x32xf32>
    %36 = tpu.concatenate %35, %3, %1 in 1 : vector<2x32xf32>, vector<2x16xf32>, vector<2x32xf32> -> vector<2x80xf32>
    %c0_23 = arith.constant 0 : index
    %c0_24 = arith.constant 0 : index
    %37 = vector.load %arg8[%c0_23, %c0_24] : memref<80x128xf32, #tpu.memory_space<vmem>>, vector<80x128xf32>
    %cst_25 = arith.constant dense<0.000000e+00> : vector<2x128xf32>
    %38 = tpu.matmul %36, %37, %cst_25 {dimension_numbers = #tpu.dot_dimension_numbers<[1], [0], [0], [1], [0, 0, 1, 1], [], []>} : vector<2x80xf32>, vector<80x128xf32>, vector<2x128xf32> -> vector<2x128xf32>
    %c0_26 = arith.constant 0 : index
    %c0_27 = arith.constant 0 : index
    %39 = vector.load %arg9[%c0_26, %c0_27] : memref<1x128xf32, #tpu.memory_space<vmem>>, vector<1x128xf32>
    %40 = vector.broadcast %39 : vector<1x128xf32> to vector<2x128xf32>
    %41 = arith.addf %38, %40 : vector<2x128xf32>
    %42 = vector.extract_strided_slice %41 {offsets = [0, 0], sizes = [2, 32], strides = [1, 1]} : vector<2x128xf32> to vector<2x32xf32>
    %43 = arith.negf %42 : vector<2x32xf32>
    %44 = math.exp %43 : vector<2x32xf32>
    %cst_28 = arith.constant 1.000000e+00 : f32
    %45 = vector.broadcast %cst_28 : f32 to vector<2x32xf32>
    %46 = arith.addf %45, %44 : vector<2x32xf32>
    %47 = arith.divf %45, %46 : vector<2x32xf32>
    %48 = vector.extract_strided_slice %41 {offsets = [0, 32], sizes = [2, 32], strides = [1, 1]} : vector<2x128xf32> to vector<2x32xf32>
    %49 = arith.negf %48 : vector<2x32xf32>
    %50 = math.exp %49 : vector<2x32xf32>
    %cst_29 = arith.constant 1.000000e+00 : f32
    %51 = vector.broadcast %cst_29 : f32 to vector<2x32xf32>
    %52 = arith.addf %51, %50 : vector<2x32xf32>
    %53 = arith.divf %51, %52 : vector<2x32xf32>
    %54 = vector.extract_strided_slice %41 {offsets = [0, 64], sizes = [2, 32], strides = [1, 1]} : vector<2x128xf32> to vector<2x32xf32>
    %55 = math.tanh %54 : vector<2x32xf32>
    %56 = vector.extract_strided_slice %41 {offsets = [0, 96], sizes = [2, 32], strides = [1, 1]} : vector<2x128xf32> to vector<2x32xf32>
    %57 = arith.negf %56 : vector<2x32xf32>
    %58 = math.exp %57 : vector<2x32xf32>
    %cst_30 = arith.constant 1.000000e+00 : f32
    %59 = vector.broadcast %cst_30 : f32 to vector<2x32xf32>
    %60 = arith.addf %59, %58 : vector<2x32xf32>
    %61 = arith.divf %59, %60 : vector<2x32xf32>
    %62 = arith.mulf %53, %2 : vector<2x32xf32>
    %63 = arith.mulf %47, %55 : vector<2x32xf32>
    %64 = arith.addf %62, %63 : vector<2x32xf32>
    %65 = math.tanh %64 : vector<2x32xf32>
    %66 = arith.mulf %61, %65 : vector<2x32xf32>
    %c0_31 = arith.constant 0 : index
    %c0_32 = arith.constant 0 : index
    %67 = vector.load %arg10[%c0_31, %c0_32] : memref<2x32xf32, #tpu.memory_space<vmem>>, vector<2x32xf32>
    tpu.vector_store %arg10[%c0_31, %c0_32], %66 {strides = array<i32>} : memref<2x32xf32, #tpu.memory_space<vmem>>, vector<2x32xf32>,
    %c0_33 = arith.constant 0 : index
    %c0_34 = arith.constant 0 : index
    %68 = vector.load %arg11[%c0_33, %c0_34] : memref<2x32xf32, #tpu.memory_space<vmem>>, vector<2x32xf32>
    tpu.vector_store %arg11[%c0_33, %c0_34], %64 {strides = array<i32>} : memref<2x32xf32, #tpu.memory_space<vmem>>, vector<2x32xf32>,
    return
  }
}

</mosaic_0001>

<bundles_post_ra>
// kernel: tpu_custom_call.1
= control target key start
LH: loop header
LB: loop body
LE: loop exit
PB: predicated region body
PF: predicated region fallthrough
CT: control target
= control target key end

     0   :  { %18 = vsyncpa [#allocation3], 0  ;;  %s1340_s0 = inlined_call_operand.hbm [shape: f32[2,16,32], index: 0, kind: input, shape index: {}]   ;;  %s1341_s1 = inlined_call_operand.vmem [shape: f32[2,32], index: 1, kind: input, shape index: {}]   ;;  %s1342_s2 = inlined_call_operand.vmem [shape: f32[2,32], index: 2, kind: input, shape index: {}]   ;;  %s1343_s3 = inlined_call_operand.vmem [shape: f32[2,16], index: 3, kind: input, shape index: {}]   ;;  %s1344_s4 = inlined_call_operand.hbm [shape: f32[32,32], index: 4, kind: input, shape index: {}]   ;;  %s1345_s5 = inlined_call_operand.hbm [shape: f32[32,32], index: 5, kind: input, shape index: {}]   ;;  %s1346_s6 = inlined_call_operand.vmem [shape: f32[1,32], index: 6, kind: input, shape index: {}]   ;;  %s1347_s7 = inlined_call_operand.vmem [shape: f32[1,32], index: 7, kind: input, shape index: {}]   ;;  %s1348_s8 = inlined_call_operand.hbm [shape: f32[80,128], index: 8, kind: input, shape index: {}]   ;;  %s1349_s9 = inlined_call_operand.vmem [shape: f32[1,128], index: 9, kind: input, shape index: {}]   ;;  %s1350_s10 = inlined_call_operand.hbm [shape: f32[2,32], index: 10, kind: output, shape index: {0}]   ;;  %s1351_s11 = inlined_call_operand.hbm [shape: f32[2,32], index: 11, kind: output, shape index: {1}]   ;;  %s1352_s12 = inlined_call_operand.hbm [shape: f32[2,16], index: 12, kind: output, shape index: {2}]  }
   0x1   :  { %19 = vsyncpa [#allocation6], 0 }
   0x2   :  { %20 = vsyncpa [#allocation9], 0 }
   0x3   :  { %21 = vsyncpa [#allocation4], 0 }
   0x4   :  { %22 = vsyncpa [#allocation12], 0  ;;  %s1038_s21 = smov [#allocation5]   ;;  %s1039_s23 = smov [#allocation2]  }
   0x5   :  { %s46_s22 = sshll.u32 %s1038_s21, 4  ;;  %s28_s24 = sshll.u32 %s1039_s23, 4  ;;  %s47_s22 = int_to_ptr.vmem [resolvable:$true] %s46_s22  ;;  %s1121_s24 = int_to_ptr.vmem [resolvable:$true] %s28_s24 }
   0x6   :  { %s874_s27 = scalar_lea.hbm %s1344_s4, 512 }
   0x7   :  { %p875_p0 = scmp.ne.s32.totalorder %s1344_s4, %s874_s27  ;;  %p878_p1 = scmp.lt.u32.totalorder %s874_s27, %s1344_s4 }
   0x9   :  { %p880_p2 = pnand %p878_p1, %p875_p0 }
   0xb   :  { %883 = shalt.err (!%p880_p2)
}
   0xc   :  { %s884_s14 = scalar_lea.vmem %s47_s22, 512  ;;  %p889_p4 = scmp.lt.s32.totalorder %s47_s22, %s47_s22 }
   0xd   :  { %p885_p3 = scmp.ne.s32.totalorder %s47_s22, %s884_s14  ;;  %p890_p5 = scmp.lt.s32.totalorder %s884_s14, %s884_s14 }
   0xf   :  { %p891_p6 = por %p890_p5, %p889_p4 }
  0x11   :  { %p892_p7 = pnand %p891_p6, %p885_p3 }
  0x13   :  { %895 = shalt.err (!%p892_p7)
}
  0x14   :  { %s1040_s15 = smov 128   ;;  %s1041_s16 = smov 8  }
  0x15   :  { %52 = dma.hbm_to_vmem [thread:$0]  %s1344_s4, 512, %s47_s22, [#allocation6], %s1040_s15, %s1040_s15, %s1041_s16  }
  0x16   :  { %s896_s21 = scalar_lea.hbm %s1340_s0, 512 }
  0x17   :  { %p897_p8 = scmp.ne.s32.totalorder %s1340_s0, %s896_s21  ;;  %p900_p9 = scmp.lt.u32.totalorder %s896_s21, %s1340_s0 }
  0x19   :  { %p902_p10 = pnand %p900_p9, %p897_p8 }
  0x1b   :  { %905 = shalt.err (!%p902_p10)
}
  0x1c   :  { %s906_s28 = scalar_lea.vmem %s1121_s24, 512  ;;  %p911_p12 = scmp.lt.s32.totalorder %s1121_s24, %s1121_s24 }
  0x1d   :  { %p907_p11 = scmp.ne.s32.totalorder %s1121_s24, %s906_s28  ;;  %p912_p13 = scmp.lt.s32.totalorder %s906_s28, %s906_s28 }
  0x1f   :  { %p913_p0 = por %p912_p13, %p911_p12 }
  0x21   :  { %p914_p1 = pnand %p913_p0, %p907_p11 }
  0x23   :  { %917 = shalt.err (!%p914_p1)
}
  0x24   :  { %34 = dma.hbm_to_vmem [thread:$0]  %s1340_s0, 512, %s1121_s24, [#allocation3], %s1040_s15, %s1040_s15, %s1041_s16  }
  0x25   :  { %s1042_s29 = smov [#allocation7]   ;;  %s1043_s13 = smov [#allocation8]  }
  0x26   :  { %s58_s30 = sshll.u32 %s1042_s29, 4  ;;  %s74_s14 = sshll.u32 %s1043_s13, 4  ;;  %s59_s30 = int_to_ptr.vmem [resolvable:$true] %s58_s30  ;;  %s1158_s14 = int_to_ptr.vmem [resolvable:$true] %s74_s14 }
  0x27   :  { %s918_s19 = scalar_lea.hbm %s1345_s5, 512 }
  0x28   :  { %p919_p2 = scmp.ne.s32.totalorder %s1345_s5, %s918_s19  ;;  %p922_p3 = scmp.lt.u32.totalorder %s918_s19, %s1345_s5 }
  0x2a   :  { %p924_p4 = pnand %p922_p3, %p919_p2 }
  0x2c   :  { %927 = shalt.err (!%p924_p4)
}
  0x2d   :  { %s928_s0 = scalar_lea.vmem %s59_s30, 512  ;;  %p933_p6 = scmp.lt.s32.totalorder %s59_s30, %s59_s30 }
  0x2e   :  { %p929_p5 = scmp.ne.s32.totalorder %s59_s30, %s928_s0  ;;  %p934_p7 = scmp.lt.s32.totalorder %s928_s0, %s928_s0 }
  0x30   :  { %p935_p8 = por %p934_p7, %p933_p6 }
  0x32   :  { %p936_p9 = pnand %p935_p8, %p929_p5 }
  0x34   :  { %939 = shalt.err (!%p936_p9)
}
  0x35   :  { %64 = dma.hbm_to_vmem [thread:$0]  %s1345_s5, 512, %s59_s30, [#allocation6], %s1040_s15, %s1040_s15, %s1041_s16  }
  0x36   :  { %s940_s4 = scalar_lea.hbm %s1348_s8, 1280 }
  0x37   :  { %p941_p10 = scmp.ne.s32.totalorder %s1348_s8, %s940_s4  ;;  %p944_p11 = scmp.lt.u32.totalorder %s940_s4, %s1348_s8 }
  0x39   :  { %p946_p12 = pnand %p944_p11, %p941_p10 }
  0x3b   :  { %949 = shalt.err (!%p946_p12)
}
  0x3c   :  { %s950_s18 = scalar_lea.vmem %s1158_s14, 1280  ;;  %p955_p0 = scmp.lt.s32.totalorder %s1158_s14, %s1158_s14 }
  0x3d   :  { %p951_p13 = scmp.ne.s32.totalorder %s1158_s14, %s950_s18  ;;  %p956_p1 = scmp.lt.s32.totalorder %s950_s18, %s950_s18 }
  0x3f   :  { %p957_p2 = por %p956_p1, %p955_p0 }
  0x41   :  { %p958_p3 = pnand %p957_p2, %p951_p13 }
  0x43   :  { %961 = shalt.err (!%p958_p3)
}
  0x44   :  { %80 = dma.hbm_to_vmem [thread:$0]  %s1348_s8, 1280, %s1158_s14, [#allocation9], %s1040_s15, %s1040_s15, %s1041_s16  }
  0x45   :  { %1028 = dma.done.wait [#allocation3], 512  }
  0x46   :  { %1029 = vsyncadd [#allocation3], 4294966784 }
  0x47   :  { %1030 = dma.done.wait [#allocation6], 1024  }
  0x48   :  { %1031 = vsyncadd [#allocation6], 4294966272 }
  0x49   :  { %1032 = dma.done.wait [#allocation9], 1280  }
  0x4a   :  { %1033 = vsyncadd [#allocation9], 4294966016  ;;  %v1044_v0 = vmov 0.0|0.0   ;;  %vm1045_vm0 = vmmov 0   ;;  %v1046_v1 = vmov 0.0   ;;  %vm106_vm1 = vcmask 261120  }
  0x4b   :  { %811 = vmatprep.subr.bf16.mxu0 %v1044_v0  ;;  %794 = vmatprep.mubr.msk.f32.mxu0 %vm1045_vm0, %v1046_v1  ;;  %v102_v2 = vld [vmem:[#allocation5] sm:$0xff]  ;;  %v103_v3 = vld [vmem:[#allocation5 + $0x8] sm:$0xff]  ;;  %v104_v4 = vld [vmem:[#allocation5 + $0x10] sm:$0xff]  ;;  %v1047_v19 = vmov 1966171168   ;;  %v292_v21 = vlaneseq  ;;  %vm367_vm2 = vcmask 130112  }
  0x4c   :  { %v797_v5 = vpack.c.bf16 %v103_v3, %v102_v2  ;;  %v105_v6 = vld [vmem:[#allocation5 + $0x18] sm:$0xff]  ;;  %v1197_v7 = vld [vmem:[#allocation2] sm:$0xff]  ;;  %v205_v10 = vld [vmem:[#allocation7 + $0x8] sm:$0xff]  ;;  %v290_v20 = vunpack.c.l.s4 %v1047_v19  ;;  %vm378_vm3 = vcmask 1041409   ;;  %vm381_vm4 = vcmask 123904   ;;  %s1049_s20 = smov 32  }
  0x4d   :  { %v801_v8 = vpack.c.bf16 %v105_v6, %v104_v4  ;;  %757 = vmatprep.mubr.msk.f32.mxu1 %vm106_vm1, %v1197_v7  ;;  %v204_v9 = vld [vmem:[#allocation7] sm:$0xff]  ;;  %v1201_v11 = vld [vmem:[#allocation2 + $0x8] sm:$0xff]  ;;  %v1204_v13 = vld [vmem:[#allocation2 + $0x10] sm:$0xff]  ;;  %v1223_v25 = vshrl.u32 %v292_v21, 7  ;;  %v357_v57 = vand.u32 127, %v292_v21  ;;  %vm539_vm5 = vcmask 392192  }
  0x4e   :  { %798 = vmatprep.subr.bf16.mxu1 %v797_v5  ;;  %v806_v12 = vpack.c.bf16 %v205_v10, %v204_v9  ;;  %v206_v14 = vld [vmem:[#allocation7 + $0x10] sm:$0xff]  ;;  %v207_v15 = vld [vmem:[#allocation7 + $0x18] sm:$0xff]  ;;  %v1219_v18 = vld [vmem:[%s1341_s1] sm:$0x3]  ;;  %v291_v24 = vunpack.c.0.s8 %v290_v20  ;;  %vm558_vm6 = vcmask 654336   ;;  %s1051_s25 = smov 64  }
  0x4f   :  { %800 = vmatpush3.bf16.msra.mxu1 %v797_v5  ;;  %v1210_v16 = vld [vmem:[#allocation2 + $0x18] sm:$0xff]  ;;  %v809_v17 = vpack.c.bf16 %v207_v15, %v206_v14  ;;  %v719_v28 = vld [vmem:[%s1346_s6] ss:$0 sm:$0xff]  ;;  %v1230_v34 = vsub.s32 0, %v1223_v25  ;;  %v362_v58 = vadd.s32 4294967288, %v357_v57  ;;  %v1245_v62 = vsub.s32 %v357_v57, %v1223_v25 }
  0x50   :  { %802 = vmatprep.subr.bf16.mxu1 %v801_v8  ;;  %v294_v29 = vsub.s32 %v291_v24, %v1223_v25  ;;  %v721_v44 = vld [vmem:[%s1347_s7] ss:$0 sm:$0xff]  ;;  %v392_v14 = vsub.s32 1, %v1223_v25  ;;  %vm664_vm7 = vcmask 254976  }
  0x51   :  { %v1242_v60 = vsub.s32 %v362_v58, %v1223_v25  ;;  %v544_v58 = vld [vmem:[#allocation8 + $0x18] sm:$0xff] }
  0x53   :  { %804 = vmatpush3.bf16.msra.mxu1 %v801_v8 }
  0x54   :  { %805 = vmatprep.subr.bf16.mxu1 %v1044_v0 }
  0x56   :  { %758 = vmatmul.mubr.msk.f32.vlgmr.msra.gmra.mrb[0].mxu1 %vm106_vm1, %v1201_v11 }
  0x57   :  { %807 = vmatpush3.bf16.msra.mxu1 %v806_v12  ;;  %760 = vmatprep.mubr.msk.f32.mxu1 %vm106_vm1, %v1204_v13  ;;  %v1048_v12 = vmov 0  }
  0x58   :  { %808 = vmatprep.subr.bf16.mxu1 %v1044_v0  ;;  %845 = vset.pattern.permute.xlu0 %v1048_v12 }
  0x59   :  { %844 = vset.pattern.permute.xlu1 %v1048_v12 }
  0x5a   :  { %761 = vmatmul.mubr.msk.f32.gmra.mrb[2].mxu1 %vm106_vm1, %v1210_v16 }
  0x5b   :  { %810 = vmatpush3.bf16.msra.mxu1 %v809_v17  ;;  %771 = vmatprep.mubr.msk.f32.mxu1 %vm1045_vm0, %v1046_v1 }
  0x5e   :  { %772 = vmatmul.mubr.msk.f32.vlgmr.msra.gmra.mrb[4].mxu1 %vm106_vm1, %v1219_v18 }
 0x129   :  { %v759_v22 = vpop.f32.mrb[0].mxu1 }
 0x12a   :  { %v185_v23 = vpop.f32.mrb[1].mxu1 }
 0x12d   :  { %v762_v26 = vpop.f32.mrb[2].mxu1 }
 0x12e   :  { %v195_v27 = vpop.f32.mrb[3].mxu1 }
 0x131   :  { %v284_v30 = vpop.f32.mrb[4].mxu1 }
 0x132   :  { %v285_v31 = vadd.f32 %v719_v28, %v284_v30  ;;  %v773_v32 = vpop.f32.mrb[5].mxu1 }
 0x134   :  { %v295_v33 = vrot.slane %v285_v31, %v294_v29 }
 0x136   :  { %v296_v35 = vcombine.high %v295_v33, %v295_v33  ;;  %v303_v36 = vrot.slane %v295_v33, %v294_v29 }
 0x138   :  { %v310_v37 = vrot.slane %v296_v35, %v294_v29  ;;  %v314_v38 = vrot.slane %v303_v36, %v1230_v34 }
 0x13a   :  { %v318_v39 = vrot.slane %v310_v37, %v1230_v34  ;;  %v321_v40 = vadd.f32 %v314_v38, %v185_v23  ;;  %v322_v41 = vadd.f32 %v759_v22, %v314_v38 }
 0x13c   :  { %v323_v42 = vadd.f32 %v318_v39, %v195_v27  ;;  %v324_v43 = vadd.f32 %v762_v26, %v318_v39  ;;  %846 = vtanh.f32 %v321_v40 }
 0x13d   :  { %848 = vtanh.f32 %v322_v41 }
 0x13e   :  { %850 = vtanh.f32 %v323_v42 }
 0x13f   :  { %852 = vtanh.f32 %v324_v43 }
 0x146   :  { %v847_v45 = vpop.eup %846 }
 0x147   :  { %v849_v46 = vpop.eup %848  ;;  %v336_v47 = vmul.f32 %v847_v45, %v721_v44  ;;  %v101_v45 = vld [vmem:[%s1343_s3] sm:$0x3]  ;;  %s1050_s3 = smov 48  }
 0x148   :  { %v851_v48 = vpop.eup %850  ;;  %v337_v52 = vmul.f32 %v849_v46, %v721_v44 }
 0x149   :  { %v853_v49 = vpop.eup %852  ;;  %v340_v50 = vsel %vm106_vm1, %v336_v47, 0.0  ;;  %v338_v51 = vmul.f32 %v851_v48, %v721_v44 }
 0x14a   :  { %341 = vadd.xlane.f32.xlu0 %v340_v50  ;;  %v339_v54 = vmul.f32 %v853_v49, %v721_v44  ;;  %v343_v55 = vsel %vm106_vm1, %v337_v52, 0.0 }
 0x14b   :  { %v346_v53 = vsel %vm106_vm1, %v338_v51, 0.0 }
 0x14c   :  { %347 = vadd.xlane.f32.xlu1 %v346_v53  ;;  %v349_v56 = vsel %vm106_vm1, %v339_v54, 0.0 }
 0x14e   :  { %344 = vadd.xlane.f32.xlu0 %v343_v55  ;;  %v541_v55 = vld [vmem:[#allocation8] sm:$0xff] }
 0x150   :  { %350 = vadd.xlane.f32.xlu1 %v349_v56  ;;  %v542_v56 = vld [vmem:[#allocation8 + $0x8] sm:$0xff] }
 0x151   :  { %v812_v57 = vpack.c.bf16 %v542_v56, %v541_v55 }
 0x153   :  { %813 = vmatpush3.bf16.msra.mxu0 %v812_v57 }
 0x154   :  { %814 = vmatprep.subr.bf16.mxu0 %v1044_v0 }
 0x1d7   :  { %v342_v59 = vpop.xlane.xlu0 %341 }
 0x1d8   :  { %v361_v3 = vrot.slane %v342_v59, %v1245_v62 }
 0x1d9   :  { %v348_v61 = vpop.xlane.xlu1 %347 }
 0x1da   :  { %v372_v4 = vrot.slane %v348_v61, %v1245_v62 }
 0x1db   :  { %v345_v63 = vpop.xlane.xlu0 %344 }
 0x1dc   :  { %v366_v1 = vrot.slane %v345_v63, %v1242_v60 }
 0x1dd   :  { %v351_v2 = vpop.xlane.xlu1 %350 }
 0x1de   :  { %v376_v5 = vrot.slane %v351_v2, %v1242_v60  ;;  %v368_v6 = vsel %vm367_vm2, %v366_v1, %v361_v3  ;;  %v548_v3 = vld [vmem:[#allocation8 + $0x38] sm:$0xff] }
 0x1e0   :  { %v377_v8 = vsel %vm367_vm2, %v376_v5, %v372_v4  ;;  %v549_v5 = vld [vmem:[#allocation8 + $0x40] sm:$0xff] }
 0x1e1   :  { %v379_v9 = vsel %vm378_vm3, %v377_v8, %v368_v6 }
 0x1e2   :  { %v382_v10 = vsel %vm381_vm4, %v379_v9, -inf }
 0x1e3   :  { %383 = vmax.xlane.f32.xlu0 %v382_v10 }
 0x270   :  { %v384_v15 = vpop.xlane.xlu0 %383 }
 0x271   :  { %v389_v17 = vrot.slane %v384_v15, %v1230_v34  ;;  %v393_v19 = vrot.slane %v384_v15, %v392_v14 }
 0x273   :  { %v396_v20 = vsub.f32 %v342_v59, %v389_v17  ;;  %v397_v21 = vsub.f32 %v345_v63, %v389_v17  ;;  %v398_v22 = vsub.f32 %v348_v61, %v393_v19  ;;  %v399_v26 = vsub.f32 %v351_v2, %v393_v19  ;;  %v545_v61 = vld [vmem:[#allocation8 + $0x20] sm:$0xff]  ;;  %v546_v63 = vld [vmem:[#allocation8 + $0x28] sm:$0xff]  ;;  %v547_v2 = vld [vmem:[#allocation8 + $0x30] sm:$0xff] }
 0x274   :  { %v818_v1 = vpack.c.bf16 %v546_v63, %v545_v61  ;;  %v821_v4 = vpack.c.bf16 %v548_v3, %v547_v2 }
 0x275   :  { %v400_v23 = vmul.f32 1.442695, %v396_v20  ;;  %v402_v24 = vmul.f32 1.442695, %v397_v21  ;;  %v404_v27 = vmul.f32 1.442695, %v398_v22 }
 0x276   :  { %v406_v28 = vmul.f32 1.442695, %v399_v26 }
 0x277   :  { %854 = vpow2.f32 %v400_v23 }
 0x278   :  { %856 = vpow2.f32 %v402_v24 }
 0x279   :  { %858 = vpow2.f32 %v404_v27 }
 0x27a   :  { %860 = vpow2.f32 %v406_v28 }
 0x281   :  { %v855_v29 = vpop.eup %854 }
 0x282   :  { %v857_v30 = vpop.eup %856  ;;  %413 = vperm.xlu1 %844, %v855_v29  }
 0x283   :  { %416 = vperm.xlu0 %845, %v857_v30   ;;  %v859_v25 = vpop.eup %858 }
 0x284   :  { %v861_v31 = vpop.eup %860 }
 0x286   :  { %419 = vperm.xlu1 %844, %v859_v25  }
 0x28a   :  { %422 = vperm.xlu1 %844, %v861_v31  }
 0x301   :  { %v414_v32 = vpop.permute.xlu1 %413 }
 0x302   :  { %v417_v33 = vpop.permute.xlu0 %416  ;;  %v427_v37 = vrot.slane %v414_v32, %v1245_v62 }
 0x303   :  { %v431_v36 = vrot.slane %v417_v33, %v1242_v60 }
 0x305   :  { %v420_v35 = vpop.permute.xlu1 %419  ;;  %v432_v41 = vsel %vm367_vm2, %v431_v36, %v427_v37 }
 0x306   :  { %v436_v39 = vrot.slane %v420_v35, %v1245_v62 }
 0x309   :  { %v423_v38 = vpop.permute.xlu1 %422 }
 0x30a   :  { %v440_v40 = vrot.slane %v423_v38, %v1242_v60 }
 0x30c   :  { %v441_v42 = vsel %vm367_vm2, %v440_v40, %v436_v39 }
 0x30d   :  { %v442_v43 = vsel %vm378_vm3, %v441_v42, %v432_v41 }
 0x30e   :  { %v444_v44 = vsel %vm381_vm4, %v442_v43, 0.0 }
 0x30f   :  { %445 = vadd.xlane.f32.xlu1 %v444_v44  ;;  %v722_v44 = vld [vmem:[%s1349_s9] ss:$0 sm:$0xff]  ;;  %s1052_s9 = smov 96  }
 0x320   :  { %532 = vrot.lane.b32.xlu1 %v101_v45, %s1049_s20 }
 0x39c   :  { %v446_v46 = vpop.xlane.xlu1 %445 }
 0x39d   :  { %v451_v47 = vrot.slane %v446_v46, %v1230_v34  ;;  %v455_v48 = vrot.slane %v446_v46, %v392_v14  ;;  %v543_v34 = vld [vmem:[#allocation8 + $0x10] sm:$0xff] }
 0x39e   :  { %v815_v59 = vpack.c.bf16 %v544_v58, %v543_v34 }
 0x39f   :  { %862 = vrcp.f32 %v451_v47 }
 0x3a0   :  { %864 = vrcp.f32 %v455_v48  ;;  %816 = vmatpush3.bf16.msra.mxu0 %v815_v59  ;;  %v533_v39 = vpop.permute.xlu1 %532 }
 0x3a1   :  { %817 = vmatprep.subr.bf16.mxu0 %v1044_v0 }
 0x3a4   :  { %819 = vmatpush3.bf16.msra.mxu0 %v818_v1 }
 0x3a5   :  { %820 = vmatprep.subr.bf16.mxu0 %v1044_v0 }
 0x3a8   :  { %822 = vmatpush3.bf16.msra.mxu0 %v821_v4 }
 0x3a9   :  { %v863_v49 = vpop.eup %862  ;;  %823 = vmatprep.subr.bf16.mxu0 %v1044_v0 }
 0x3aa   :  { %v459_v50 = vmul.f32 %v863_v49, %v855_v29  ;;  %v460_v51 = vmul.f32 %v863_v49, %v857_v30  ;;  %v865_v52 = vpop.eup %864  ;;  %v100_v49 = vld [vmem:[%s1342_s2] sm:$0x3]  ;;  %s1053_s2 = smov [#allocation11]  }
 0x3ab   :  { %v462_v53 = vmul.f32 %v865_v52, %v859_v25  ;;  %v463_v54 = vmul.f32 %v865_v52, %v861_v31  ;;  %s687_s26 = sshll.u32 %s1053_s2, 4  ;;  %s688_s26 = int_to_ptr.vmem [resolvable:$true] %s687_s26 }
 0x3ac   :  { %469 = vperm.xlu0 %845, %v459_v50   ;;  %s962_s27 = scalar_lea.vmem %s688_s26, 32  ;;  %p967_p5 = scmp.lt.s32.totalorder %s688_s26, %s688_s26 }
 0x3ad   :  { %p963_p4 = scmp.ne.s32.totalorder %s688_s26, %s962_s27  ;;  %p968_p6 = scmp.lt.s32.totalorder %s962_s27, %s962_s27 }
 0x3af   :  { %p969_p7 = por %p968_p6, %p967_p5 }
 0x3b0   :  { %472 = vperm.xlu0 %845, %v460_v51  }
 0x3b1   :  { %p970_p8 = pnand %p969_p7, %p963_p4 }
 0x3b4   :  { %475 = vperm.xlu0 %845, %v462_v53  }
 0x3b8   :  { %478 = vperm.xlu0 %845, %v463_v54  }
 0x3bc   :  { %535 = vrot.lane.b32.xlu0 %v1219_v18, %s1050_s3  ;;  %v550_v18 = vld [vmem:[#allocation8 + $0x48] sm:$0xff] }
 0x3bd   :  { %v824_v6 = vpack.c.bf16 %v550_v18, %v549_v5 }
 0x3bf   :  { %825 = vmatpush3.bf16.msra.mxu0 %v824_v6 }
 0x42b   :  { %v470_v8 = vpop.permute.xlu0 %469 }
 0x42c   :  { %v505_v9 = vmul.f32 %v470_v8, %v1197_v7  ;;  %v483_v24 = vrot.slane %v470_v8, %v1245_v62 }
 0x42e   :  { %v509_v14 = vsel %vm106_vm1, %v505_v9, 0.0 }
 0x42f   :  { %v473_v10 = vpop.permute.xlu0 %472 }
 0x430   :  { %v506_v12 = vmul.f32 %v473_v10, %v1201_v11  ;;  %v487_v21 = vrot.slane %v473_v10, %v1242_v60 }
 0x432   :  { %v510_v15 = vsel %vm106_vm1, %v506_v12, 0.0  ;;  %v488_v27 = vsel %vm367_vm2, %v487_v21, %v483_v24 }
 0x433   :  { %v511_v17 = vadd.f32 %v510_v15, %v509_v14  ;;  %v476_v19 = vpop.permute.xlu0 %475 }
 0x434   :  { %v507_v22 = vmul.f32 %v476_v19, %v1204_v13  ;;  %v492_v7 = vrot.slane %v476_v19, %v1245_v62 }
 0x435   :  { %v512_v20 = vrot.slane %v511_v17, 4 }
 0x436   :  { %v518_v28 = vsel %vm106_vm1, %v507_v22, 0.0 }
 0x437   :  { %v513_v23 = vadd.f32 %v512_v20, %v511_v17  ;;  %v479_v0 = vpop.permute.xlu0 %478 }
 0x438   :  { %v496_v26 = vrot.slane %v479_v0, %v1242_v60  ;;  %v508_v11 = vmul.f32 %v479_v0, %v1210_v16 }
 0x439   :  { %v514_v25 = vrot.slane %v513_v23, 2 }
 0x43a   :  { %v497_v29 = vsel %vm367_vm2, %v496_v26, %v492_v7  ;;  %v519_v30 = vsel %vm106_vm1, %v508_v11, 0.0 }
 0x43b   :  { %v520_v13 = vadd.f32 %v519_v30, %v518_v28  ;;  %v498_v31 = vsel %vm378_vm3, %v497_v29, %v488_v27  ;;  %v515_v62 = vadd.f32 %v514_v25, %v513_v23  ;;  %v536_v40 = vpop.permute.xlu0 %535 }
 0x43c   :  { %500 = vst.msk [vmem:[#allocation13] sm:$0x3] %vm381_vm4, %v498_v31 }
 0x43d   :  { %v521_v32 = vrot.slane %v520_v13, 4  ;;  %v516_v16 = vrot.slane %v515_v62, 1 }
 0x43f   :  { %v522_v33 = vadd.f32 %v521_v32, %v520_v13  ;;  %v517_v37 = vadd.f32 %v516_v16, %v515_v62 }
 0x441   :  { %v523_v60 = vrot.slane %v522_v33, 2 }
 0x443   :  { %v524_v35 = vadd.f32 %v523_v60, %v522_v33 }
 0x445   :  { %v525_v36 = vrot.slane %v524_v35, 1 }
 0x447   :  { %v526_v38 = vadd.f32 %v525_v36, %v524_v35 }
 0x449   :  { %v529_v41 = vsel %vm378_vm3, %v526_v38, %v517_v37 }
 0x44a   :  { %v538_v42 = vsel %vm106_vm1, %v529_v41, %v533_v39 }
 0x44b   :  { %v540_v43 = vsel %vm539_vm5, %v538_v42, %v536_v40 }
 0x44c   :  { %795 = vmatmul.mubr.msk.f32.vlgmr.msra.gmra.mrb[0].mxu0 %vm558_vm6, %v540_v43 }
 0x51f   :  { %v628_v45 = vpop.f32.mrb[0].mxu0 }
 0x520   :  { %v629_v46 = vadd.f32 %v722_v44, %v628_v45  ;;  %v796_v47 = vpop.f32.mrb[1].mxu0 }
 0x522   :  { %866 = vtanh.f32 %v629_v46  ;;  %v724_v50 = vmul.f32 -1.442695, %v629_v46 }
 0x524   :  { %868 = vpow2.f32 %v724_v50 }
 0x52c   :  { %v867_v48 = vpop.eup %866 }
 0x52d   :  { %645 = vrot.lane.b32.xlu0 %v867_v48, %s1051_s25 }
 0x52e   :  { %v869_v51 = vpop.eup %868 }
 0x52f   :  { %v635_v52 = vadd.f32 1.0, %v869_v51 }
 0x531   :  { %640 = vrot.lane.b32.xlu0 %v100_v49, %s1049_s20  ;;  %870 = vrcp.f32 %v635_v52 }
 0x53b   :  { %v871_v53 = vpop.eup %870 }
 0x59f   :  { %v646_v54 = vpop.permute.xlu0 %645 }
 0x5a0   :  { %v648_v55 = vmul.f32 %v871_v53, %v646_v54 }
 0x5a2   :  { %650 = vrot.lane.b32.xlu0 %v648_v55, %s1049_s20 }
 0x5a3   :  { %v641_v56 = vpop.permute.xlu0 %640 }
 0x5a4   :  { %v643_v57 = vmul.f32 %v871_v53, %v641_v56 }
 0x614   :  { %v651_v34 = vpop.permute.xlu0 %650 }
 0x615   :  { %v653_v58 = vadd.f32 %v651_v34, %v643_v57 }
 0x617   :  { %872 = vtanh.f32 %v653_v58  ;;  %667 = vrot.lane.b32.xlu0 %v653_v58, %s1052_s9 }
 0x621   :  { %v873_v59 = vpop.eup %872 }
 0x622   :  { %656 = vrot.lane.b32.xlu1 %v873_v59, %s1051_s25 }
 0x689   :  { %v668_v61 = vpop.permute.xlu0 %667 }
 0x68a   :  { %670 = vst.msk [vmem:[#allocation11] sm:$0x3] %vm664_vm7, %v668_v61 }
 0x68b   :  { %973 = shalt.err (!%p970_p8)
}
 0x68c   :  { %s974_s22 = scalar_lea.hbm %s1351_s11, 32 }
 0x68d   :  { %p975_p9 = scmp.ne.s32.totalorder %s1351_s11, %s974_s22  ;;  %p978_p10 = scmp.lt.u32.totalorder %s974_s22, %s1351_s11 }
 0x68f   :  { %p980_p11 = pnand %p978_p10, %p975_p9 }
 0x691   :  { %983 = shalt.err (!%p980_p11)
}
 0x692   :  { %690 = dma.vmem_to_hbm [thread:$0]  %s688_s26, 32, %s1351_s11, [#allocation12]  }
 0x693   :  { %s1054_s8 = smov [#allocation13]  }
 0x694   :  { %s697_s15 = sshll.u32 %s1054_s8, 4  ;;  %s698_s15 = int_to_ptr.vmem [resolvable:$true] %s697_s15 }
 0x695   :  { %s984_s16 = scalar_lea.vmem %s698_s15, 32  ;;  %p989_p13 = scmp.lt.s32.totalorder %s698_s15, %s698_s15 }
 0x696   :  { %p985_p12 = scmp.ne.s32.totalorder %s698_s15, %s984_s16  ;;  %p990_p0 = scmp.lt.s32.totalorder %s984_s16, %s984_s16 }
 0x698   :  { %p991_p1 = por %p990_p0, %p989_p13 }
 0x69a   :  { %p992_p2 = pnand %p991_p1, %p985_p12 }
 0x69c   :  { %995 = shalt.err (!%p992_p2)
}
 0x69d   :  { %s996_s6 = scalar_lea.hbm %s1352_s12, 32 }
 0x69e   :  { %p997_p3 = scmp.ne.s32.totalorder %s1352_s12, %s996_s6  ;;  %p1000_p4 = scmp.lt.u32.totalorder %s996_s6, %s1352_s12 }
 0x6a0   :  { %p1002_p5 = pnand %p1000_p4, %p997_p3 }
 0x6a2   :  { %1005 = shalt.err (!%p1002_p5)
}
 0x6a3   :  { %700 = dma.vmem_to_hbm [thread:$0]  %s698_s15, 32, %s1352_s12, [#allocation12]   ;;  %v657_v63 = vpop.permute.xlu1 %656 }
 0x6a4   :  { %v659_v1 = vmul.f32 %v871_v53, %v657_v63  ;;  %s1055_s25 = smov [#allocation10]  }
 0x6a5   :  { %s677_s0 = sshll.u32 %s1055_s25, 4  ;;  %s678_s0 = int_to_ptr.vmem [resolvable:$true] %s677_s0 }
 0x6a6   :  { %661 = vrot.lane.b32.xlu1 %v659_v1, %s1049_s20  ;;  %s1006_s24 = scalar_lea.vmem %s678_s0, 32  ;;  %p1011_p7 = scmp.lt.s32.totalorder %s678_s0, %s678_s0 }
 0x6a7   :  { %p1007_p6 = scmp.ne.s32.totalorder %s678_s0, %s1006_s24  ;;  %p1012_p8 = scmp.lt.s32.totalorder %s1006_s24, %s1006_s24 }
 0x6a9   :  { %p1013_p9 = por %p1012_p8, %p1011_p7 }
 0x6ab   :  { %p1014_p10 = pnand %p1013_p9, %p1007_p6 }
 0x718   :  { %v662_v2 = vpop.permute.xlu1 %661 }
 0x719   :  { %665 = vst.msk [vmem:[#allocation10] sm:$0x3] %vm664_vm7, %v662_v2 }
 0x71a   :  { %1017 = shalt.err (!%p1014_p10)
}
 0x71b   :  { %s1018_s12 = scalar_lea.hbm %s1350_s10, 32 }
 0x71c   :  { %p1019_p11 = scmp.ne.s32.totalorder %s1350_s10, %s1018_s12  ;;  %p1022_p12 = scmp.lt.u32.totalorder %s1018_s12, %s1350_s10 }
 0x71e   :  { %p1024_p13 = pnand %p1022_p12, %p1019_p11 }
 0x720   :  { %1027 = shalt.err (!%p1024_p13)
}
 0x721   :  { %680 = dma.vmem_to_hbm [thread:$0]  %s678_s0, 32, %s1350_s10, [#allocation4]  }
 0x722   :  { %1034 = dma.done.wait [#allocation4], 32  }
 0x723   :  { %1035 = vsyncadd [#allocation4], 4294967264 }
 0x724   :  { %1036 = dma.done.wait [#allocation12], 64  }
 0x725   :  { %1037 = vsyncadd [#allocation12], 4294967232 }
 0x726   :  { %710 = vsyncpa [#allocation3], 1 }
 0x727   :  { %711 = vsyncpa [#allocation6], 1 }
 0x728   :  { %712 = vsyncpa [#allocation9], 1 }
 0x729   :  { %713 = vsyncpa [#allocation4], 1 }
 0x72a   :  { %714 = vsyncpa [#allocation12], 1 }

</bundles_post_ra>
